<compile_context>
chip_gen: v5e
topology: v5e:2x2
jax: 0.10.0
libtpu: 0.0.40
codegen_flags: <defaults>
</compile_context>

<pallas_src>
import math

import jax
import jax.numpy as jnp
from jax import lax
from jax.experimental import pallas as pl
from jax.experimental.pallas import tpu as pltpu


def make_mha_kernel(inv_scale, compute_dtype):
    """Builds the per-(batch, q-tile, head) attention kernel."""

    def kernel(q_ref, k_ref, v_ref,
               wq_ref, bq_ref, wk_ref, bk_ref,
               wv_ref, bv_ref, wo_ref, bo_ref,
               out_ref, attn_ref, acc_ref):
        h = pl.program_id(2)

        q = q_ref[0].astype(compute_dtype)      # (TQ, H)
        k = k_ref[0].astype(compute_dtype)      # (S,  H)
        v = v_ref[0].astype(compute_dtype)      # (S,  H)
        wq = wq_ref[0]                          # (H, hd)  (already compute_dtype)
        wk = wk_ref[0]
        wv = wv_ref[0]
        wo = wo_ref[0]                          # (hd, H)

        # Per-head projections: full-H contraction on the MXU, f32 accumulation.
        # Scale is folded into Q (cheap: TQ*hd elements vs TQ*S divides).
        Qh = (jnp.dot(q, wq, preferred_element_type=jnp.float32)
              + bq_ref[0]) * inv_scale                                  # (TQ, hd)
        Kh = jnp.dot(k, wk, preferred_element_type=jnp.float32) + bk_ref[0]   # (S, hd)
        Vh = jnp.dot(v, wv, preferred_element_type=jnp.float32) + bv_ref[0]   # (S, hd)

        # energy = Qh @ Kh^T without materializing a transpose (contract last dims).
        e = lax.dot_general(Qh.astype(compute_dtype), Kh.astype(compute_dtype),
                            (((1,), (1,)), ((), ())),
                            preferred_element_type=jnp.float32)          # (TQ, S)

        # Softmax over the key axis (f32).  Denominator reciprocal on the EUP
        # (approx) + one Newton step to keep ~f32 accuracy.
        m = jnp.max(e, axis=-1, keepdims=True)
        p = jnp.exp(e - m)
        denom = jnp.sum(p, axis=-1, keepdims=True)
        inv = pl.reciprocal(denom, approx=True)
        inv = inv * (2.0 - denom * inv)
        attn = p * inv

        attn_ref[0, 0] = attn.astype(attn_ref.dtype)

        # TODO(synk): nn.Dropout(attention) is identity in eval mode.
        ctx = jnp.dot(attn.astype(compute_dtype), Vh.astype(compute_dtype),
                      preferred_element_type=jnp.float32)                # (TQ, hd)

        # Output projection accumulated per head (no lane-dim concat).
        @pl.when(h == 0)
        def _():
            acc_ref[...] = jnp.zeros_like(acc_ref)

        acc_ref[...] += jnp.dot(ctx.astype(compute_dtype), wo,
                                preferred_element_type=jnp.float32)      # (TQ, H)

        @pl.when(h == pl.num_programs(2) - 1)
        def _():
            out_ref[0] = (acc_ref[...] + bo_ref[...]).astype(out_ref.dtype)

    return kernel


def mha_forward(query, key, value, params, n_heads, *,
                compute_dtype=jnp.float32, tq=None):
    """Pallas wrapper. query/key/value: (B, S, H)."""
    B, S, H = query.shape
    assert H % n_heads == 0
    hd = H // n_heads
    inv_scale = 1.0 / math.sqrt(hd)
    wq, bq, wk, bk, wv, bv, wo, bo = params

    if tq is None:
        tq = min(S, 128)
    if S % tq != 0:
        tq = S
    n_q = S // tq

    # Per-head weight layout, built once in plain JAX (free layout plumbing):
    #   wq_h[h] == wq[:, h*hd:(h+1)*hd],  wo_h[h] == wo[h*hd:(h+1)*hd, :]
    def split_cols(w):
        return jnp.transpose(w.reshape(H, n_heads, hd), (1, 0, 2)).astype(compute_dtype)

    wq_h = split_cols(wq)
    wk_h = split_cols(wk)
    wv_h = split_cols(wv)
    wo_h = wo.reshape(n_heads, hd, H).astype(compute_dtype)
    bq_h = bq.reshape(n_heads, 1, hd)     # biases stay f32 (added post-accumulation)
    bk_h = bk.reshape(n_heads, 1, hd)
    bv_h = bv.reshape(n_heads, 1, hd)

    kernel = make_mha_kernel(inv_scale, compute_dtype)

    q_spec = pl.BlockSpec((1, tq, H), lambda b, qi, h: (b, qi, 0))
    kv_spec = pl.BlockSpec((1, S, H), lambda b, qi, h: (b, 0, 0))
    wp_spec = pl.BlockSpec((1, H, hd), lambda b, qi, h: (h, 0, 0))
    bp_spec = pl.BlockSpec((1, 1, hd), lambda b, qi, h: (h, 0, 0))
    wo_spec = pl.BlockSpec((1, hd, H), lambda b, qi, h: (h, 0, 0))
    bo_spec = pl.BlockSpec((1, H), lambda b, qi, h: (0, 0))

    out, attn = pl.pallas_call(
        kernel,
        out_shape=(
            jax.ShapeDtypeStruct((B, S, H), query.dtype),
            jax.ShapeDtypeStruct((B, n_heads, S, S), jnp.float32),
        ),
        grid=(B, n_q, n_heads),
        in_specs=[
            q_spec, kv_spec, kv_spec,        # query, key, value
            wp_spec, bp_spec,                # fc_q (per head)
            wp_spec, bp_spec,                # fc_k (per head)
            wp_spec, bp_spec,                # fc_v (per head)
            wo_spec, bo_spec,                # fc_o (per head rows) + bias
        ],
        out_specs=(
            pl.BlockSpec((1, tq, H), lambda b, qi, h: (b, qi, 0)),
            pl.BlockSpec((1, 1, tq, S), lambda b, qi, h: (b, h, qi, 0)),
        ),
        scratch_shapes=[pltpu.VMEM((tq, H), jnp.float32)],
        compiler_params=pltpu.CompilerParams(
            dimension_semantics=("parallel", "parallel", "arbitrary")),
    )(query, key, value, wq_h, bq_h, wk_h, bk_h, wv_h, bv_h, wo_h, bo)
    return out, attn


def mha_reference(query, key, value, params, n_heads):
    """Plain-JAX reference mirroring the PyTorch forward (mask=None, eval mode)."""
    wq, bq, wk, bk, wv, bv, wo, bo = params
    B, S, H = query.shape
    hd = H // n_heads
    Q = query @ wq + bq
    K = key @ wk + bk
    V = value @ wv + bv
    Q = Q.reshape(B, S, n_heads, hd).transpose(0, 2, 1, 3)
    K = K.reshape(B, S, n_heads, hd).transpose(0, 2, 1, 3)
    V = V.reshape(B, S, n_heads, hd).transpose(0, 2, 1, 3)
    energy = jnp.einsum("bhqd,bhkd->bhqk", Q, K) / math.sqrt(hd)
    attn = jax.nn.softmax(energy, axis=-1)
    x = jnp.einsum("bhqk,bhkd->bhqd", attn, V)
    x = x.transpose(0, 2, 1, 3).reshape(B, S, H)
    x = x @ wo + bo
    return x, attn


if __name__ == "__main__":
    B, S, H = 2, 8, 32
    N_HEADS = 4

    key0 = jax.random.PRNGKey(0)
    keys = jax.random.split(key0, 12)

    # Deterministic parameter init (PyTorch-Linear-style uniform range).
    bound = 1.0 / math.sqrt(H)

    def u(k, shape):
        return jax.random.uniform(k, shape, jnp.float32, -bound, bound)

    wq, bq = u(keys[0], (H, H)), u(keys[1], (1, H))
    wk, bk = u(keys[2], (H, H)), u(keys[3], (1, H))
    wv, bv = u(keys[4], (H, H)), u(keys[5], (1, H))
    wo, bo = u(keys[6], (H, H)), u(keys[7], (1, H))
    params = (wq, bq, wk, bk, wv, bv, wo, bo)

    query = jax.random.normal(keys[8], (B, S, H), jnp.float32)
    key_in = jax.random.normal(keys[9], (B, S, H), jnp.float32)
    value = jax.random.normal(keys[10], (B, S, H), jnp.float32)

    ref_out, ref_attn = mha_reference(query, key_in, value, params, N_HEADS)

    # f32 MXU-operand path: tight correctness check.
    out, attn = mha_forward(query, key_in, value, params, N_HEADS,
                            compute_dtype=jnp.float32)
    out = jax.block_until_ready(out)
    attn = jax.block_until_ready(attn)
    assert out.shape == (B, S, H)
    assert attn.shape == (B, N_HEADS, S, S)
    assert jnp.allclose(out, ref_out, atol=5e-4, rtol=5e-4)
    assert jnp.allclose(attn, ref_attn, atol=2e-4, rtol=2e-4)

    # bf16 MXU-operand path (production configuration): looser tolerance,
    # softmax and accumulation remain f32.
    out_bf, attn_bf = mha_forward(query, key_in, value, params, N_HEADS,
                                  compute_dtype=jnp.bfloat16)
    out_bf = jax.block_until_ready(out_bf)
    attn_bf = jax.block_until_ready(attn_bf)
    assert jnp.allclose(out_bf, ref_out, atol=1e-1, rtol=1e-1)
    assert jnp.allclose(attn_bf, ref_attn, atol=5e-2, rtol=5e-2)

    print("KERNEL_OK")
</pallas_src>

<mosaic_0001>
module attributes {stable_mosaic.version = 11 : i64} {
  func.func @kernel(%arg0: i32, %arg1: i32, %arg2: i32, %arg3: memref<1x8x32xf32, #tpu.memory_space<vmem>>, %arg4: memref<1x8x32xf32, #tpu.memory_space<vmem>>, %arg5: memref<1x8x32xf32, #tpu.memory_space<vmem>>, %arg6: memref<1x32x8xf32, #tpu.memory_space<vmem>>, %arg7: memref<1x1x8xf32, #tpu.memory_space<vmem>>, %arg8: memref<1x32x8xf32, #tpu.memory_space<vmem>>, %arg9: memref<1x1x8xf32, #tpu.memory_space<vmem>>, %arg10: memref<1x32x8xf32, #tpu.memory_space<vmem>>, %arg11: memref<1x1x8xf32, #tpu.memory_space<vmem>>, %arg12: memref<1x8x32xf32, #tpu.memory_space<vmem>>, %arg13: memref<1x32xf32, #tpu.memory_space<vmem>>, %arg14: memref<1x8x32xf32, #tpu.memory_space<vmem>>, %arg15: memref<1x1x8x8xf32, #tpu.memory_space<vmem>>, %arg16: memref<8x32xf32, #tpu.memory_space<vmem>>) attributes {dimension_semantics = [#tpu.dimension_semantics<parallel>, #tpu.dimension_semantics<parallel>, #tpu.dimension_semantics<arbitrary>], iteration_bounds = array<i64: 2, 1, 4>, scalar_prefetch = 0 : i64, scratch_operands = 1 : i64, tpu.core_type = #tpu.core_type<tc>, window_params = [{transform_indices = @transform_0, window_bounds = array<i64: 1, 8, 32>}, {transform_indices = @transform_1, window_bounds = array<i64: 1, 8, 32>}, {transform_indices = @transform_2, window_bounds = array<i64: 1, 8, 32>}, {transform_indices = @transform_3, window_bounds = array<i64: 1, 32, 8>}, {transform_indices = @transform_4, window_bounds = array<i64: 1, 1, 8>}, {transform_indices = @transform_5, window_bounds = array<i64: 1, 32, 8>}, {transform_indices = @transform_6, window_bounds = array<i64: 1, 1, 8>}, {transform_indices = @transform_7, window_bounds = array<i64: 1, 32, 8>}, {transform_indices = @transform_8, window_bounds = array<i64: 1, 1, 8>}, {transform_indices = @transform_9, window_bounds = array<i64: 1, 8, 32>}, {pipeline_mode = #tpu.pipeline_mode<synchronous>, transform_indices = @transform_10, window_bounds = array<i64: 1, 32>}, {transform_indices = @transform_11, window_bounds = array<i64: 1, 8, 32>}, {transform_indices = @transform_12, window_bounds = array<i64: 1, 1, 8, 8>}]} {
    %c0 = arith.constant 0 : index
    %c0_0 = arith.constant 0 : index
    %c0_1 = arith.constant 0 : index
    %0 = vector.load %arg3[%c0, %c0_0, %c0_1] : memref<1x8x32xf32, #tpu.memory_space<vmem>>, vector<1x8x32xf32>
    %1 = vector.shape_cast %0 : vector<1x8x32xf32> to vector<8x32xf32>
    %c0_2 = arith.constant 0 : index
    %c0_3 = arith.constant 0 : index
    %c0_4 = arith.constant 0 : index
    %2 = vector.load %arg4[%c0_2, %c0_3, %c0_4] : memref<1x8x32xf32, #tpu.memory_space<vmem>>, vector<1x8x32xf32>
    %3 = vector.shape_cast %2 : vector<1x8x32xf32> to vector<8x32xf32>
    %c0_5 = arith.constant 0 : index
    %c0_6 = arith.constant 0 : index
    %c0_7 = arith.constant 0 : index
    %4 = vector.load %arg5[%c0_5, %c0_6, %c0_7] : memref<1x8x32xf32, #tpu.memory_space<vmem>>, vector<1x8x32xf32>
    %5 = vector.shape_cast %4 : vector<1x8x32xf32> to vector<8x32xf32>
    %c0_8 = arith.constant 0 : index
    %c0_9 = arith.constant 0 : index
    %c0_10 = arith.constant 0 : index
    %6 = vector.load %arg6[%c0_8, %c0_9, %c0_10] : memref<1x32x8xf32, #tpu.memory_space<vmem>>, vector<1x32x8xf32>
    %7 = vector.shape_cast %6 : vector<1x32x8xf32> to vector<32x8xf32>
    %c0_11 = arith.constant 0 : index
    %c0_12 = arith.constant 0 : index
    %c0_13 = arith.constant 0 : index
    %8 = vector.load %arg8[%c0_11, %c0_12, %c0_13] : memref<1x32x8xf32, #tpu.memory_space<vmem>>, vector<1x32x8xf32>
    %9 = vector.shape_cast %8 : vector<1x32x8xf32> to vector<32x8xf32>
    %c0_14 = arith.constant 0 : index
    %c0_15 = arith.constant 0 : index
    %c0_16 = arith.constant 0 : index
    %10 = vector.load %arg10[%c0_14, %c0_15, %c0_16] : memref<1x32x8xf32, #tpu.memory_space<vmem>>, vector<1x32x8xf32>
    %11 = vector.shape_cast %10 : vector<1x32x8xf32> to vector<32x8xf32>
    %c0_17 = arith.constant 0 : index
    %c0_18 = arith.constant 0 : index
    %c0_19 = arith.constant 0 : index
    %12 = vector.load %arg12[%c0_17, %c0_18, %c0_19] : memref<1x8x32xf32, #tpu.memory_space<vmem>>, vector<1x8x32xf32>
    %13 = vector.shape_cast %12 : vector<1x8x32xf32> to vector<8x32xf32>
    %cst = arith.constant dense<0.000000e+00> : vector<8x8xf32>
    %14 = tpu.matmul %1, %7, %cst {dimension_numbers = #tpu.dot_dimension_numbers<[1], [0], [0], [1], [0, 0, 1, 1], [], []>} : vector<8x32xf32>, vector<32x8xf32>, vector<8x8xf32> -> vector<8x8xf32>
    %c0_20 = arith.constant 0 : index
    %c0_21 = arith.constant 0 : index
    %c0_22 = arith.constant 0 : index
    %15 = vector.load %arg7[%c0_20, %c0_21, %c0_22] : memref<1x1x8xf32, #tpu.memory_space<vmem>>, vector<1x1x8xf32>
    %16 = vector.shape_cast %15 : vector<1x1x8xf32> to vector<1x8xf32>
    %17 = vector.broadcast %16 : vector<1x8xf32> to vector<8x8xf32>
    %18 = arith.addf %14, %17 : vector<8x8xf32>
    %cst_23 = arith.constant 0.353553385 : f32
    %19 = vector.broadcast %cst_23 : f32 to vector<8x8xf32>
    %20 = arith.mulf %18, %19 : vector<8x8xf32>
    %cst_24 = arith.constant dense<0.000000e+00> : vector<8x8xf32>
    %21 = tpu.matmul %3, %9, %cst_24 {dimension_numbers = #tpu.dot_dimension_numbers<[1], [0], [0], [1], [0, 0, 1, 1], [], []>} : vector<8x32xf32>, vector<32x8xf32>, vector<8x8xf32> -> vector<8x8xf32>
    %c0_25 = arith.constant 0 : index
    %c0_26 = arith.constant 0 : index
    %c0_27 = arith.constant 0 : index
    %22 = vector.load %arg9[%c0_25, %c0_26, %c0_27] : memref<1x1x8xf32, #tpu.memory_space<vmem>>, vector<1x1x8xf32>
    %23 = vector.shape_cast %22 : vector<1x1x8xf32> to vector<1x8xf32>
    %24 = vector.broadcast %23 : vector<1x8xf32> to vector<8x8xf32>
    %25 = arith.addf %21, %24 : vector<8x8xf32>
    %cst_28 = arith.constant dense<0.000000e+00> : vector<8x8xf32>
    %26 = tpu.matmul %5, %11, %cst_28 {dimension_numbers = #tpu.dot_dimension_numbers<[1], [0], [0], [1], [0, 0, 1, 1], [], []>} : vector<8x32xf32>, vector<32x8xf32>, vector<8x8xf32> -> vector<8x8xf32>
    %c0_29 = arith.constant 0 : index
    %c0_30 = arith.constant 0 : index
    %c0_31 = arith.constant 0 : index
    %27 = vector.load %arg11[%c0_29, %c0_30, %c0_31] : memref<1x1x8xf32, #tpu.memory_space<vmem>>, vector<1x1x8xf32>
    %28 = vector.shape_cast %27 : vector<1x1x8xf32> to vector<1x8xf32>
    %29 = vector.broadcast %28 : vector<1x8xf32> to vector<8x8xf32>
    %30 = arith.addf %26, %29 : vector<8x8xf32>
    %cst_32 = arith.constant dense<0.000000e+00> : vector<8x8xf32>
    %31 = tpu.matmul %20, %25, %cst_32 {dimension_numbers = #tpu.dot_dimension_numbers<[1], [1], [0], [0], [0, 0, 1, 0], [], []>} : vector<8x8xf32>, vector<8x8xf32>, vector<8x8xf32> -> vector<8x8xf32>
    %cst_33 = arith.constant dense<0xFF800000> : vector<8xf32>
    %32 = vector.multi_reduction <maximumf>, %31, %cst_33 [1] : vector<8x8xf32> to vector<8xf32>
    %33 = vector.shape_cast %32 : vector<8xf32> to vector<8x1xf32>
    %34 = vector.broadcast %33 : vector<8x1xf32> to vector<8x8xf32>
    %35 = arith.subf %31, %34 : vector<8x8xf32>
    %36 = math.exp %35 : vector<8x8xf32>
    %cst_34 = arith.constant dense<0.000000e+00> : vector<8xf32>
    %37 = vector.multi_reduction <add>, %36, %cst_34 [1] : vector<8x8xf32> to vector<8xf32>
    %38 = vector.shape_cast %37 : vector<8xf32> to vector<8x1xf32>
    %39 = tpu.reciprocal %38 {approx = true} : vector<8x1xf32> -> vector<8x1xf32>
    %40 = arith.mulf %38, %39 : vector<8x1xf32>
    %cst_35 = arith.constant 2.000000e+00 : f32
    %41 = vector.broadcast %cst_35 : f32 to vector<8x1xf32>
    %42 = arith.subf %41, %40 : vector<8x1xf32>
    %43 = arith.mulf %39, %42 : vector<8x1xf32>
    %44 = vector.broadcast %43 : vector<8x1xf32> to vector<8x8xf32>
    %45 = arith.mulf %36, %44 : vector<8x8xf32>
    %c0_36 = arith.constant 0 : index
    %c0_37 = arith.constant 0 : index
    %c0_38 = arith.constant 0 : index
    %c0_39 = arith.constant 0 : index
    %46 = vector.load %arg15[%c0_36, %c0_37, %c0_38, %c0_39] : memref<1x1x8x8xf32, #tpu.memory_space<vmem>>, vector<1x1x8x8xf32>
    %47 = vector.shape_cast %46 : vector<1x1x8x8xf32> to vector<8x8xf32>
    %48 = vector.shape_cast %45 : vector<8x8xf32> to vector<1x1x8x8xf32>
    tpu.vector_store %arg15[%c0_36, %c0_37, %c0_38, %c0_39], %48 {strides = array<i32>} : memref<1x1x8x8xf32, #tpu.memory_space<vmem>>, vector<1x1x8x8xf32>,
    %cst_40 = arith.constant dense<0.000000e+00> : vector<8x8xf32>
    %49 = tpu.matmul %45, %30, %cst_40 {dimension_numbers = #tpu.dot_dimension_numbers<[1], [0], [0], [1], [0, 0, 1, 1], [], []>} : vector<8x8xf32>, vector<8x8xf32>, vector<8x8xf32> -> vector<8x8xf32>
    %c0_i32 = arith.constant 0 : i32
    %50 = arith.cmpi eq, %arg2, %c0_i32 : i32
    %51 = arith.extui %50 : i1 to i32
    %c0_i32_41 = arith.constant 0 : i32
    %52 = arith.cmpi ne, %51, %c0_i32_41 : i32
    scf.if %52 {
      %cst_48 = arith.constant 0.000000e+00 : f32
      %60 = vector.broadcast %cst_48 : f32 to vector<8x32xf32>
      %c0_49 = arith.constant 0 : index
      %c0_50 = arith.constant 0 : index
      %61 = vector.load %arg16[%c0_49, %c0_50] : memref<8x32xf32, #tpu.memory_space<vmem>>, vector<8x32xf32>
      tpu.vector_store %arg16[%c0_49, %c0_50], %60 {strides = array<i32>} : memref<8x32xf32, #tpu.memory_space<vmem>>, vector<8x32xf32>,
    } else {
    }
    %c0_42 = arith.constant 0 : index
    %c0_43 = arith.constant 0 : index
    %53 = vector.load %arg16[%c0_42, %c0_43] : memref<8x32xf32, #tpu.memory_space<vmem>>, vector<8x32xf32>
    %cst_44 = arith.constant dense<0.000000e+00> : vector<8x32xf32>
    %54 = tpu.matmul %49, %13, %cst_44 {dimension_numbers = #tpu.dot_dimension_numbers<[1], [0], [0], [1], [0, 0, 1, 1], [], []>} : vector<8x8xf32>, vector<8x32xf32>, vector<8x32xf32> -> vector<8x32xf32>
    %55 = arith.addf %53, %54 : vector<8x32xf32>
    %c0_45 = arith.constant 0 : index
    %c0_46 = arith.constant 0 : index
    %56 = vector.load %arg16[%c0_45, %c0_46] : memref<8x32xf32, #tpu.memory_space<vmem>>, vector<8x32xf32>
    tpu.vector_store %arg16[%c0_45, %c0_46], %55 {strides = array<i32>} : memref<8x32xf32, #tpu.memory_space<vmem>>, vector<8x32xf32>,
    %c3_i32 = arith.constant 3 : i32
    %57 = arith.cmpi eq, %arg2, %c3_i32 : i32
    %58 = arith.extui %57 : i1 to i32
    %c0_i32_47 = arith.constant 0 : i32
    %59 = arith.cmpi ne, %58, %c0_i32_47 : i32
    scf.if %59 {
      %c0_48 = arith.constant 0 : index
      %c0_49 = arith.constant 0 : index
      %60 = vector.load %arg16[%c0_48, %c0_49] : memref<8x32xf32, #tpu.memory_space<vmem>>, vector<8x32xf32>
      %c0_50 = arith.constant 0 : index
      %c0_51 = arith.constant 0 : index
      %61 = vector.load %arg13[%c0_50, %c0_51] : memref<1x32xf32, #tpu.memory_space<vmem>>, vector<1x32xf32>
      %62 = vector.broadcast %61 : vector<1x32xf32> to vector<8x32xf32>
      %63 = arith.addf %60, %62 : vector<8x32xf32>
      %c0_52 = arith.constant 0 : index
      %c0_53 = arith.constant 0 : index
      %c0_54 = arith.constant 0 : index
      %64 = vector.load %arg14[%c0_52, %c0_53, %c0_54] : memref<1x8x32xf32, #tpu.memory_space<vmem>>, vector<1x8x32xf32>
      %65 = vector.shape_cast %64 : vector<1x8x32xf32> to vector<8x32xf32>
      %66 = vector.shape_cast %63 : vector<8x32xf32> to vector<1x8x32xf32>
      tpu.vector_store %arg14[%c0_52, %c0_53, %c0_54], %66 {strides = array<i32>} : memref<1x8x32xf32, #tpu.memory_space<vmem>>, vector<1x8x32xf32>,
    } else {
    }
    return
  }
  func.func @transform_0(%arg0: i32, %arg1: i32, %arg2: i32) -> (i32, i32, i32) {
    %c0_i32 = arith.constant 0 : i32
    %c0_i32_0 = arith.constant 0 : i32
    return %arg0, %arg1, %c0_i32 : i32, i32, i32
  }
  func.func @transform_1(%arg0: i32, %arg1: i32, %arg2: i32) -> (i32, i32, i32) {
    %c0_i32 = arith.constant 0 : i32
    %c0_i32_0 = arith.constant 0 : i32
    %c0_i32_1 = arith.constant 0 : i32
    return %arg0, %c0_i32, %c0_i32_0 : i32, i32, i32
  }
  func.func @transform_2(%arg0: i32, %arg1: i32, %arg2: i32) -> (i32, i32, i32) {
    %c0_i32 = arith.constant 0 : i32
    %c0_i32_0 = arith.constant 0 : i32
    %c0_i32_1 = arith.constant 0 : i32
    return %arg0, %c0_i32, %c0_i32_0 : i32, i32, i32
  }
  func.func @transform_3(%arg0: i32, %arg1: i32, %arg2: i32) -> (i32, i32, i32) {
    %c0_i32 = arith.constant 0 : i32
    %c0_i32_0 = arith.constant 0 : i32
    %c0_i32_1 = arith.constant 0 : i32
    return %arg2, %c0_i32, %c0_i32_0 : i32, i32, i32
  }
  func.func @transform_4(%arg0: i32, %arg1: i32, %arg2: i32) -> (i32, i32, i32) {
    %c0_i32 = arith.constant 0 : i32
    %c0_i32_0 = arith.constant 0 : i32
    %c0_i32_1 = arith.constant 0 : i32
    return %arg2, %c0_i32, %c0_i32_0 : i32, i32, i32
  }
  func.func @transform_5(%arg0: i32, %arg1: i32, %arg2: i32) -> (i32, i32, i32) {
    %c0_i32 = arith.constant 0 : i32
    %c0_i32_0 = arith.constant 0 : i32
    %c0_i32_1 = arith.constant 0 : i32
    return %arg2, %c0_i32, %c0_i32_0 : i32, i32, i32
  }
  func.func @transform_6(%arg0: i32, %arg1: i32, %arg2: i32) -> (i32, i32, i32) {
    %c0_i32 = arith.constant 0 : i32
    %c0_i32_0 = arith.constant 0 : i32
    %c0_i32_1 = arith.constant 0 : i32
    return %arg2, %c0_i32, %c0_i32_0 : i32, i32, i32
  }
  func.func @transform_7(%arg0: i32, %arg1: i32, %arg2: i32) -> (i32, i32, i32) {
    %c0_i32 = arith.constant 0 : i32
    %c0_i32_0 = arith.constant 0 : i32
    %c0_i32_1 = arith.constant 0 : i32
    return %arg2, %c0_i32, %c0_i32_0 : i32, i32, i32
  }
  func.func @transform_8(%arg0: i32, %arg1: i32, %arg2: i32) -> (i32, i32, i32) {
    %c0_i32 = arith.constant 0 : i32
    %c0_i32_0 = arith.constant 0 : i32
    %c0_i32_1 = arith.constant 0 : i32
    return %arg2, %c0_i32, %c0_i32_0 : i32, i32, i32
  }
  func.func @transform_9(%arg0: i32, %arg1: i32, %arg2: i32) -> (i32, i32, i32) {
    %c0_i32 = arith.constant 0 : i32
    %c0_i32_0 = arith.constant 0 : i32
    %c0_i32_1 = arith.constant 0 : i32
    return %arg2, %c0_i32, %c0_i32_0 : i32, i32, i32
  }
  func.func @transform_10(%arg0: i32, %arg1: i32, %arg2: i32) -> (i32, i32) {
    %c0_i32 = arith.constant 0 : i32
    %c0_i32_0 = arith.constant 0 : i32
    %c0_i32_1 = arith.constant 0 : i32
    return %c0_i32, %c0_i32_0 : i32, i32
  }
  func.func @transform_11(%arg0: i32, %arg1: i32, %arg2: i32) -> (i32, i32, i32) {
    %c0_i32 = arith.constant 0 : i32
    %c0_i32_0 = arith.constant 0 : i32
    return %arg0, %arg1, %c0_i32 : i32, i32, i32
  }
  func.func @transform_12(%arg0: i32, %arg1: i32, %arg2: i32) -> (i32, i32, i32, i32) {
    %c0_i32 = arith.constant 0 : i32
    %c0_i32_0 = arith.constant 0 : i32
    return %arg0, %arg2, %arg1, %c0_i32 : i32, i32, i32, i32
  }
}

</mosaic_0001>

<bundles_post_ra>
// kernel: tpu_custom_call.1
= control target key start
LH: loop header
LB: loop body
LE: loop exit
PB: predicated region body
PF: predicated region fallthrough
CT: control target
= control target key end

     0   :  { %s1708_s0 = inlined_call_operand.vmem [shape: f32[2,8,32], index: 0, kind: input, shape index: {}]   ;;  %s1709_s1 = inlined_call_operand.vmem [shape: f32[2,8,32], index: 1, kind: input, shape index: {}]   ;;  %s1710_s2 = inlined_call_operand.vmem [shape: f32[2,8,32], index: 2, kind: input, shape index: {}]   ;;  %s1711_s3 = inlined_call_operand.vmem [shape: f32[4,32,8], index: 3, kind: input, shape index: {}]   ;;  %s1712_s4 = inlined_call_operand.vmem [shape: f32[4,1,8], index: 4, kind: input, shape index: {}]   ;;  %s1713_s5 = inlined_call_operand.vmem [shape: f32[4,32,8], index: 5, kind: input, shape index: {}]   ;;  %s1714_s6 = inlined_call_operand.vmem [shape: f32[4,1,8], index: 6, kind: input, shape index: {}]   ;;  %s1715_s7 = inlined_call_operand.vmem [shape: f32[4,32,8], index: 7, kind: input, shape index: {}]   ;;  %s1716_s8 = inlined_call_operand.vmem [shape: f32[4,1,8], index: 8, kind: input, shape index: {}]   ;;  %s1717_s9 = inlined_call_operand.vmem [shape: f32[4,8,32], index: 9, kind: input, shape index: {}]   ;;  %s1718_s10 = inlined_call_operand.vmem [shape: f32[1,32], index: 10, kind: input, shape index: {}]   ;;  %s1719_s11 = inlined_call_operand.hbm [shape: f32[2,8,32], index: 11, kind: output, shape index: {0}]   ;;  %s1720_s12 = inlined_call_operand.hbm [shape: f32[2,4,8,8], index: 12, kind: output, shape index: {1}]  }
   0x1   :  { %1736 = sst [smem:[#allocation20_spill]] %s1708_s0 }
   0x2   :  { %1737 = sst [smem:[#allocation21_spill]] %s1709_s1 }
   0x3   :  { %1738 = sst [smem:[#allocation22_spill]] %s1710_s2 }
   0x4   :  { %1739 = sst [smem:[#allocation23_spill]] %s1711_s3 }
   0x5   :  { %1740 = sst [smem:[#allocation24_spill]] %s1712_s4 }
   0x6   :  { %1741 = sst [smem:[#allocation25_spill]] %s1713_s5 }
   0x7   :  { %1742 = sst [smem:[#allocation26_spill]] %s1716_s8 }
   0x8   :  { %1743 = sst [smem:[#allocation27_spill]] %s1718_s10 }
   0x9   :  { %1744 = sst [smem:[#allocation28_spill]] %s1719_s11 }
   0xa   :  { %1745 = sst [smem:[#allocation29_spill]] %s1720_s12 }
   0xb   :  { %18 = vsyncpa [#allocation4], 0 }
   0xc   :  { %20 = vsyncpa [#allocation4 + $0x1], 0 }
   0xd   :  { %21 = vsyncpa [#allocation6], 0 }
   0xe   :  { %23 = vsyncpa [#allocation6 + $0x1], 0  ;;  %s1429_s21 = smov 0   ;;  %s1431_s22 = smov 0  }
   0xf   :  { %s1433_s23 = smov 0   ;;  %s1435_s24 = smov 0  }
  0x10   :  { %s1437_s25 = smov 0   ;;  %s1439_s26 = smov 0  }
  0x11   :  { %s1441_s27 = smov 0   ;;  %s1443_s28 = smov 0  }
  0x12   :  { %s1445_s29 = smov 0   ;;  %s1447_s30 = smov 0  }
  0x13   :  { %s1449_s13 = smov 0  }
  0x14 LB: > { %1746 = sst [smem:[#allocation9_spill]] %s1329_s23  ;;  %s1066_s14 = sadd.s32 4294967295, %s1361_s13   ;;  %s1361_s13 = sphi %s1449_s13, %s29_s13   ;;  %s1357_s30 = sphi %s1447_s30, %s1788_s30   ;;  %s1353_s29 = sphi %s1445_s29, %s1787_s29   ;;  %s1349_s28 = sphi %s1443_s28, %s1786_s28   ;;  %s1345_s27 = sphi %s1441_s27, %s1785_s27   ;;  %s1341_s26 = sphi %s1439_s26, %s1784_s26   ;;  %s1337_s25 = sphi %s1437_s25, %s1792_s25   ;;  %s1333_s24 = sphi %s1435_s24, %s1791_s24   ;;  %s1329_s23 = sphi %s1433_s23, %s1782_s23   ;;  %s1325_s22 = sphi %s1431_s22, %s1790_s22   ;;  %s1321_s21 = sphi %s1429_s21, %s1789_s21  }
  0x15   : > { %1747 = sst [smem:[#allocation10_spill]] %s1333_s24  ;;  %s1067_s15 = sadd.s32 4294967294, %s1361_s13  }
  0x16   : > { %1748 = sst [smem:[#allocation11_spill]] %s1341_s26  ;;  %s41_s16 = sadd.s32 1, %s1353_s29 }
  0x17   : > { %1749 = sst [smem:[#allocation12_spill]] %s1353_s29  ;;  %s48_s17 = sadd.s32 1, %s1357_s30 }
  0x18   : > { %1750 = sst [smem:[#allocation13_spill]] %s1357_s30  ;;  %p42_p0 = scmp.ge.s32.totalorder %s41_s16, 4 }
  0x19   : > { %s340_s18 = sadd.s32 1, %s1341_s26  ;;  %p350_p1 = scmp.ne.s32.totalorder %s1341_s26, %s1337_s25 }
  0x1a   : > { %p1491_p2 = scmp.eq.s32.totalorder %s1066_s14, 7  ;;  %s1794_s16 = smov (%p42_p0, %s41_s16), 0 }
  0x1b   : > { %1752 = sst [smem:[#allocation14_spill]] %s1794_s16  ;;  %s1796_s17 = smov (!%p42_p0, %s48_s17), %s1357_s30 }
  0x1c   : > { %p1500_p3 = por %p1491_p2, %p350_p1  ;;  %p356_p4 = scmp.ne.s32.totalorder %s1337_s25, %s1333_s24 }
  0x1d   : > { %p50_p5 = scmp.ge.s32.totalorder %s1796_s17, 2  ;;  %p1506_p6 = scmp.eq.s32.totalorder %s1067_s15, 7 }
  0x1e   : > { %s1753_s20 = scalar_select %p1500_p3, 1, 0 }
  0x1f   : > { %s364_s12 = ssub.s32 %s1353_s29, %s1794_s16  ;;  %s370_s11 = sadd.s32 1, %s1329_s23 }
  0x20   : > { %1754 = sst [smem:[#allocation15_spill]] %s1753_s20  ;;  %s1798_s17 = smov (%p50_p5, %s1796_s17), 0 }
  0x21   : > { %1756 = sst [smem:[#allocation16_spill]] %s1798_s17  ;;  %p1517_p7 = por %p1506_p6, %p356_p4 }
  0x22   : > { %p380_p8 = scmp.ne.s32.totalorder %s1329_s23, %s1325_s22  ;;  %s335_s24 = ssub.s32 %s1357_s30, %s1798_s17 }
  0x23   : > { %p386_p9 = scmp.ne.s32.totalorder %s1325_s22, %s1321_s21  ;;  %p338_p10 = scmp.eq.s32.totalorder %s335_s24, 0 }
  0x24   : > { %s365_s15 = sor.u32 %s364_s12, %s335_s24  ;;  %p1529_p12 = por %p380_p8, %p1491_p2 }
  0x25   : > { %p368_p11 = scmp.eq.s32.totalorder %s365_s15, 0  ;;  %p1541_p13 = por %p386_p9, %p1506_p6 }
  0x26   : > { %s1534_s16 = scalar_select %p338_p10, %s1341_s26, %s340_s18  }
  0x27   : > { %s1537_s29 = scalar_select %p368_p11, %s1329_s23, %s370_s11  }
  0x28   : > { %1759 = sst [smem:[#allocation17_spill]] %s1534_s16  ;;  %p1070_p0 = scmp.ge.s32.totalorder %s1361_s13, 1 }
  0x29   : > { %1760 = sst [smem:[#allocation18_spill]] %s1537_s29  ;;  %p481_p1 = scmp.lt.s32.totalorder %s1361_s13, 9 }
  0x2a   : > { %s1761_s8 = scalar_select %p1541_p13, 1, 0 }
  0x2b   : > { %p482_p4 = pnand %p1070_p0, %p481_p1 }
  0x2c   : > { %1762 = sst [smem:[#allocation19_spill]] %s1761_s8  ;;  %p581_p2 = scmp.lt.s32.totalorder (!%p482_p4), %s1345_s27, 3 }
  0x2d   : > { %485 = sbr.rel (%p482_p4) target bundleno = 901 (0x385), region = 64  ;;  %s1730_s12 = sand.u32 (!%p482_p4), 1, %s1337_s25  }
  0x2e   : > { %s1551_s11 = sshll.u32 (!%p482_p4), %s1730_s12, 3  ;;  %p566_p5 = scmp.lt.s32.totalorder (!%p482_p4), %s1349_s28, 1 }
  0x2f   : > { %s1763_s5 = sld [smem:[#allocation25_spill]] (!%p482_p4)  ;;  %s558_s15 = scalar_lea.vmem (!%p482_p4), [#allocation3], %s1551_s11 }
  0x30   : > { %s1764_s3 = sld [smem:[#allocation23_spill]] (!%p482_p4)  ;;  %p1089_p6 = scmp.ne.s32.totalorder (!%p482_p4), %s1345_s27, 0 }
  0x31   : > { %s1765_s1 = sld [smem:[#allocation21_spill]] (!%p482_p4) }
  0x32   : > { %s1554_s24 = scalar_select %p581_p2, %s1345_s27, 3  ;;  %vm629_vm0 = vcmask 261120   ;;  %vm708_vm1 = vcmask 64512  }
  0x33   : > { %s567_s8 = scalar_select %p566_p5, %s1349_s28, 1 }
  0x34   : > { %s1558_s18 = sshll.u32 %s1554_s24, 5  ;;  %s1082_s19 = sshll.u32 %s1554_s24, 3 }
  0x35   : > { %s593_s17 = scalar_lea.vmem %s1763_s5, %s1558_s18  ;;  %s608_s12 = scalar_lea.vmem %s1717_s9, %s1082_s19 }
  0x36   : > { %v619_v0 = vld [vmem:[%s593_s17 + $0x18] sm:$0xff]  ;;  %v1568_v1 = vld [vmem:[%s608_s12] sm:$0xff]  ;;  %s585_s23 = scalar_lea.vmem %s1764_s3, %s1558_s18  ;;  %v618_v2 = vld [vmem:[%s593_s17 + $0x10] sm:$0xff]  ;;  %s596_s30 = scalar_lea.vmem %s1714_s6, %s1554_s24 }
  0x37   : > { %673 = vmatpush.msra.mxu1 %v619_v0  ;;  %v615_v3 = vld [vmem:[%s585_s23 + $0x18] sm:$0xff]  ;;  %v614_v4 = vld [vmem:[%s585_s23 + $0x10] sm:$0xff]  ;;  %v617_v5 = vld [vmem:[%s593_s17 + $0x8] sm:$0xff]  ;;  %s1579_s16 = sshll.u32 %s567_s8, 3  ;;  %s1766_s0 = sld [smem:[#allocation20_spill]] }
  0x38   : > { %645 = vmatpush.msra.mxu0 %v615_v3  ;;  %v613_v6 = vld [vmem:[%s585_s23 + $0x8] sm:$0xff]  ;;  %v616_v7 = vld [vmem:[%s593_s17] sm:$0xff]  ;;  %s576_s12 = scalar_lea.vmem %s1765_s1, %s1579_s16  ;;  %s1767_s4 = sld [smem:[#allocation24_spill]] }
  0x39   : > { %674 = vmatpush.msra.mxu1 %v618_v2  ;;  %v612_v8 = vld [vmem:[%s585_s23] sm:$0xff]  ;;  %s601_s23 = scalar_lea.vmem %s1715_s7, %s1558_s18  ;;  %s1768_s2 = sld [smem:[#allocation22_spill]] }
  0x3a   : > { %646 = vmatpush.msra.mxu0 %v614_v4  ;;  %v610_v9 = vld [vmem:[%s576_s12] sm:$0xff]  ;;  %v623_v18 = vld [vmem:[%s601_s23 + $0x18] sm:$0xff]  ;;  %v622_v19 = vld [vmem:[%s601_s23 + $0x10] sm:$0xff]  ;;  %s1769_s12 = sld [smem:[#allocation26_spill]] }
  0x3b   : > { %675 = vmatpush.msra.mxu1 %v617_v5  ;;  %v1203_v11 = vld [vmem:[%s596_s30] ss:$0 sm:$0xff]  ;;  %700 = vmatpush.msra.mxu2 %v623_v18  ;;  %v621_v20 = vld [vmem:[%s601_s23 + $0x8] sm:$0xff] }
  0x3c   : > { %647 = vmatpush.msra.mxu0 %v613_v6  ;;  %v620_v23 = vld [vmem:[%s601_s23] sm:$0xff] }
  0x3d   : > { %s572_s5 = scalar_lea.vmem %s1766_s0, %s1579_s16  ;;  %676 = vmatpush.msra.mxu1 %v616_v7  ;;  %701 = vmatpush.msra.mxu2 %v622_v19 }
  0x3e   : > { %s588_s8 = scalar_lea.vmem %s1767_s4, %s1554_s24  ;;  %v609_v10 = vld [vmem:[%s572_s5] sm:$0xff]  ;;  %648 = vmatpush.msra.mxu0 %v612_v8  ;;  %1084 = vmatmul.msk.f32.vlgmr.msra.gmra.mxu1 %vm629_vm0, %v610_v9 }
  0x3f   : > { %1083 = vmatmul.msk.f32.vlgmr.msra.gmra.mxu0 %vm629_vm0, %v609_v10  ;;  %v1204_v12 = vld [vmem:[%s588_s8] ss:$0 sm:$0xff]  ;;  %702 = vmatpush.msra.mxu2 %v621_v20  ;;  %s580_s26 = scalar_lea.vmem %s1768_s2, %s1579_s16  ;;  %s1734_s16 = sand.u32 1, %s1325_s22  }
  0x40   : > { %v611_v24 = vld [vmem:[%s580_s26] sm:$0xff]  ;;  %s604_s19 = scalar_lea.vmem %s1769_s12, %s1554_s24  ;;  %s1615_s14 = sshll.u32 %s1734_s16, 3 }
  0x41   : > { %703 = vmatpush.msra.mxu2 %v620_v23  ;;  %v1205_v30 = vld [vmem:[%s604_s19] ss:$0 sm:$0xff]  ;;  %s1735_s24 = scalar_lea.vmem [#allocation5], %s1615_s14 }
  0x42   : > { %1085 = vmatmul.msk.f32.vlgmr.msra.gmra.mxu2 %vm629_vm0, %v611_v24 }
  0xbb   : > { %v678_v13 = vpop.f32.mrf.mxu1 }
  0xbc   : > { %v679_v14 = vadd.f32 %v1203_v11, %v678_v13  ;;  %v650_v15 = vpop.f32.mrf.mxu0 }
  0xbd   : > { %v651_v16 = vadd.f32 %v1204_v12, %v650_v15 }
  0xbe   : > { %1086 = vmatpush.xpose.msk.msra.mxu3 %vm708_vm1, %v679_v14 }
  0xbf   : > { %v653_v17 = vmul.f32 0.35355338, %v651_v16 }
  0xc1   : > { %1087 = vmatmul.msk.f32.vlgmr.msra.gmra.mxu3 %vm708_vm1, %v653_v17 }
  0xc5   : > { %v705_v31 = vpop.f32.mrf.mxu2 }
  0xc6   : > { %v706_v32 = vadd.f32 %v1205_v30, %v705_v31 }
  0xc8   : > { %768 = vmatpush.msrb.mxu3 %v706_v32 }
 0x144   : > { %v732_v21 = vpop.f32.mrf.mxu3 }
 0x145   : > { %v735_v22 = vsel %vm708_vm1, %v732_v21, -inf }
 0x146   : > { %736 = vmax.xlane.f32.xlu0 %v735_v22 }
 0x1b9   : > { %v737_v25 = vpop.xlane.xlu0 %736 }
 0x1ba   : > { %v738_v26 = vsub.f32 %v732_v21, %v737_v25 }
 0x1bc   : > { %v739_v27 = vmul.f32 1.442695, %v738_v26 }
 0x1be   : > { %1206 = vpow2.f32 %v739_v27 }
 0x1c4   : > { %v1207_v28 = vpop.eup %1206 }
 0x1c5   : > { %v741_v29 = vsel %vm708_vm1, %v1207_v28, 0.0 }
 0x1c6   : > { %742 = vadd.xlane.f32.xlu0 %v741_v29 }
 0x239   : > { %v743_v33 = vpop.xlane.xlu0 %742 }
 0x23a   : > { %1208 = vrcp.f32 %v743_v33 }
 0x240   : > { %v1209_v34 = vpop.eup %1208 }
 0x241   : > { %v745_v35 = vmul.f32 %v1209_v34, %v743_v33 }
 0x243   : > { %v746_v36 = vsub.f32 2.0, %v745_v35 }
 0x245   : > { %v747_v37 = vmul.f32 %v1209_v34, %v746_v36 }
 0x247   : > { %v748_v38 = vmul.f32 %v1207_v28, %v747_v37 }
 0x249   : > { %749 = vst.msk [vmem:[%s1735_s24] sm:$0xff] %vm708_vm1, %v748_v38  ;;  %1088 = vmatmul.msk.f32.vlgmr.msrb.gmra.mxu3 %vm708_vm1, %v748_v38 }
 0x2c8   : > { %776 = sbr.rel (%p1089_p6) target bundleno = 719 (0x2cf), region = 68 }
 0x2cc   : > { %v770_v39 = vpop.f32.mrf.mxu3 }
 0x2cd   : > { %v1363_v40 = vmov 0.0  }
 0x2ce   : > { %777 = vst.msk [vmem:[#allocation2] sm:$0xff] %vm629_vm0, %v1363_v40 }
 0x2cf PF: > { %797 = vmatpush.msrb.mxu0 %v1568_v1  ;;  %p1091_p8 = scmp.ne.s32.totalorder %s1345_s27, 3 }
 0x2d0   : > { %1090 = vmatmul.msk.f32.vlgmr.msrb.gmra.mxu0 %vm708_vm1, %v770_v39  ;;  %s1770_s3 = sld [smem:[#allocation27_spill]] (!%p1091_p8) }
 0x2d5   : > { %v778_v41 = vld [vmem:[#allocation2] sm:$0xff] }
 0x34c   : > { %807 = sbr.rel (%p1091_p8) target bundleno = 859 (0x35b), region = 72 }
 0x34d   : > { %v799_v42 = vpop.f32.mrf.mxu0 }
 0x34e   : > { %v802_v43 = vadd.f32 %v799_v42, %v778_v41 }
 0x350   : > { %803 = vst.msk [vmem:[#allocation2] sm:$0xff] %vm629_vm0, %v802_v43 }
 0x351   : > { %v1210_v45 = vld [vmem:[%s1770_s3] ss:$0 sm:$0xff] }
 0x357   : > { %v808_v44 = vld [vmem:[#allocation2] sm:$0xff] }
 0x358   : > { %v813_v46 = vadd.f32 %v1210_v45, %v808_v44 }
 0x35a   : > { %814 = vst.msk [vmem:[%s558_s15] sm:$0xff] %vm629_vm0, %v813_v46 }
 0x35b PF: > { %s1094_s23 = sshll.u32 %s1349_s28, 3  ;;  %s1772_s26 = sld [smem:[#allocation28_spill]] }
 0x35c   : > { %s834_s12 = sshll.u32 %s558_s15, 4  ;;  %s1774_s16 = sand.u32 1, %s1337_s25   ;;  %s835_s12 = int_to_ptr.vmem [resolvable:$true] %s834_s12 }
 0x35d   : > { %s816_s24 = scalar_lea.sflag [#allocation4], %s1774_s16 }
 0x361   : > { %s1773_s18 = smov %s1772_s26  ;;  %s832_s29 = scalar_lea.hbm %s1772_s26, %s1094_s23 }
 0x362   : > { %s836_s19 = sshll.u32 %s832_s29, 4  ;;  %s1231_s1 = scalar_lea.hbm %s1773_s18, 16  ;;  %s837_s19 = int_to_ptr.hbm [resolvable:$true] %s836_s19 }
 0x363   : > { %s1225_s11 = sshra.s32 %s837_s19, 4  ;;  %s1226_s11 = int_to_ptr.hbm [resolvable:$true] %s1225_s11 }
 0x364   : > { %s1227_s8 = scalar_lea.hbm %s1226_s11, 8  ;;  %p1232_p0 = scmp.lt.s32.totalorder %s1226_s11, %s1773_s18 }
 0x365   : > { %p1228_p9 = scmp.ne.s32.totalorder %s1226_s11, %s1227_s8  ;;  %p1233_p1 = scmp.lt.s32.totalorder %s1231_s1, %s1227_s8 }
 0x367   : > { %p1229_p10 = pnand %p1228_p9, %p1500_p3  ;;  %p1234_p4 = por %p1233_p1, %p1232_p0 }
 0x369   : > { %p1230_p11 = pneg %p1229_p10 }
 0x36b   : > { %p1235_p2 = pnand %p1234_p4, %p1230_p11 }
 0x36d   : > { %1238 = shalt.err (!%p1235_p2)
}
 0x36e   : > { %1102 = dma.vmem_to_hbm [thread:$0]  (%p1500_p3), %s835_s12, 128, %s837_s19, %s816_s24  }
 0x36f   : > { %s1095_s16 = sshll.u32 %s1349_s28, 2  ;;  %s1775_s15 = scalar_lea.vmem [#allocation5], %s1615_s14 }
 0x370   : > { %s851_s0 = sshll.u32 %s1775_s15, 4  ;;  %s847_s23 = sadd.s32 %s1345_s27, %s1095_s16  ;;  %s852_s0 = int_to_ptr.vmem [resolvable:$true] %s851_s0 }
 0x371   : > { %s1096_s30 = sshll.u32 %s847_s23, 3  ;;  %s1776_s29 = sld [smem:[#allocation29_spill]] }
 0x372   : > { %s1778_s3 = sand.u32 1, %s1325_s22  }
 0x373   : > { %s821_s5 = scalar_lea.sflag [#allocation6], %s1778_s3 }
 0x377   : > { %s1777_s11 = smov %s1776_s29  ;;  %s849_s1 = scalar_lea.hbm %s1776_s29, %s1096_s30 }
 0x378   : > { %s853_s8 = sshll.u32 %s849_s1, 4  ;;  %s1259_s27 = scalar_lea.hbm %s1777_s11, 64  ;;  %s854_s8 = int_to_ptr.hbm [resolvable:$true] %s853_s8 }
 0x379   : > { %s1253_s17 = sshra.s32 %s854_s8, 4  ;;  %s1254_s17 = int_to_ptr.hbm [resolvable:$true] %s1253_s17 }
 0x37a   : > { %s1255_s4 = scalar_lea.hbm %s1254_s17, 8  ;;  %p1260_p8 = scmp.lt.s32.totalorder %s1254_s17, %s1777_s11 }
 0x37b   : > { %p1256_p5 = scmp.ne.s32.totalorder %s1254_s17, %s1255_s4  ;;  %p1261_p9 = scmp.lt.s32.totalorder %s1259_s27, %s1255_s4 }
 0x37d   : > { %p1257_p3 = pnand %p1256_p5, %p1529_p12  ;;  %p1262_p10 = por %p1261_p9, %p1260_p8 }
 0x37f   : > { %p1258_p6 = pneg %p1257_p3 }
 0x381   : > { %p1263_p11 = pnand %p1262_p10, %p1258_p6 }
 0x383   : > { %1266 = shalt.err (!%p1263_p11)
}
 0x384   : > { %1103 = dma.vmem_to_hbm [thread:$0]  (%p1529_p12), %s852_s0, 128, %s854_s8, %s821_s5  }
 0x385 PF: > { %s1779_s19 = sld [smem:[#allocation10_spill]]  ;;  %p1113_p0 = scmp.ge.s32.totalorder %s1361_s13, 2 }
 0x387   : > { %p1107_p1 = pnand %p1113_p0, %p1517_p7 }
 0x389   : > { %p1108_p4 = pneg %p1107_p1 }
 0x38b   : > { %s865_s16 = sand.u32 1, %s1779_s19  }
 0x38c   : > { %s866_s15 = scalar_lea.sflag [#allocation4], %s865_s16 }
 0x38d   : > { %1312 = dma.done.wait (%p1108_p4), %s866_s15, 128  }
 0x38e   : > { %1314 = vsyncadd (%p1108_p4), %s866_s15, 4294967168  ;;  %s875_s23 = sand.u32 1, %s1321_s21   ;;  %p1110_p2 = pnand %p1113_p0, %p1541_p13 }
 0x38f   : > { %s876_s20 = scalar_lea.sflag [#allocation6], %s875_s23 }
 0x390   : > { %p1111_p5 = pneg %p1110_p2 }
 0x392   : > { %1316 = dma.done.wait (%p1111_p5), %s876_s20, 128  }
 0x393   : > { %1318 = vsyncadd (%p1111_p5), %s876_s20, 4294967168  ;;  %s29_s13 = sadd.s32 1, %s1361_s13   ;;  %s1781_s0 = sld [smem:[#allocation9_spill]] }
 0x394   : > { %p26_p12 = scmp.ge.s32.totalorder %s29_s13, 10   ;;  %s1782_s23 = sld [smem:[#allocation18_spill]] }
 0x395   : > { %s1783_s10 = sld [smem:[#allocation11_spill]]  ;;  %s1789_s21 = smov %s1325_s22 }
 0x396   : > { %s1784_s26 = sld [smem:[#allocation17_spill]]  ;;  %s1791_s24 = smov %s1337_s25 }
 0x397   : > { %s1785_s27 = sld [smem:[#allocation12_spill]]  ;;  %28 = sbr.rel (!%p26_p12) target bundleno = 20 (0x14), region = 151 }
 0x398   : > { %s1786_s28 = sld [smem:[#allocation13_spill]] }
 0x399   : > { %s1787_s29 = sld [smem:[#allocation14_spill]]  ;;  %s1790_s22 = smov %s1781_s0 }
 0x39a   : > { %s1788_s30 = sld [smem:[#allocation16_spill]] }
 0x39b   : > { %s1792_s25 = smov %s1783_s10 }
 0x39c   :  { %882 = vsyncpa [#allocation4], 1 }
 0x39d   :  { %884 = vsyncpa [#allocation4 + $0x1], 1 }
 0x39e   :  { %885 = vsyncpa [#allocation6], 1 }
 0x39f   :  { %887 = vsyncpa [#allocation6 + $0x1], 1 }

</bundles_post_ra>
